<compile_context>
chip_gen: v6e
topology: v6e:2x2x1
jax: 0.10.0
libtpu: 0.0.40
codegen_flags: <defaults>
</compile_context>

<pallas_src>
import functools

import jax
import jax.numpy as jnp
from jax.experimental import pallas as pl
from jax.experimental.pallas import tpu as pltpu


def _round_up(x, m):
    return (x + m - 1) // m * m


def _vmem_budget_bytes(thw, cin_p, tco, out_itemsize):
    """Scoped-VMEM budget: double-buffered pipeline copies + in-kernel temporaries."""
    x_blk = thw * cin_p * 2            # bf16 activation block
    w_blk = cin_p * tco * 2            # bf16 weight tile
    b_blk = tco * 4                    # f32 bias tile
    o_blk = thw * tco * out_itemsize   # output tile
    pipelined = 2 * (x_blk + w_blk + b_blk + o_blk)   # double buffering
    temporaries = 3 * x_blk + thw * tco * 4           # x_next/x_prev/shifted + f32 acc
    return int(min(pipelined + temporaries + (4 << 20), 64 << 20))


def shift_conv1x1_kernel(x_ref, w_ref, b_ref, out_ref, *, T, HW, fold):
    """One temporal segment x one Cout tile.

    x_ref: [T*HW, Cin_p] bf16 (frames stacked along sublanes, channels on lanes)
    w_ref: [Cin_p, tco]  bf16
    b_ref: [1, tco]      f32
    out_ref: [T*HW, tco] out_dtype
    """
    x = x_ref[...]                                             # bf16
    dt = x.dtype

    # ---- TemporalShift (n_div=3) as a dense per-lane select (dtype follows x) ----
    zero_frame = jnp.zeros((HW, x.shape[1]), dt)
    # frame t takes frame t+1 (last frame -> 0) for channels [0, fold)
    x_next = jnp.concatenate([x[HW:], zero_frame], axis=0)
    # frame t takes frame t-1 (first frame -> 0) for channels [fold, 2*fold)
    x_prev = jnp.concatenate([zero_frame, x[: (T - 1) * HW]], axis=0)
    lane = jax.lax.broadcasted_iota(jnp.int32, x.shape, 1)
    shifted = jnp.where(lane < fold, x_next,
                        jnp.where(lane < 2 * fold, x_prev, x))

    # ---- 1x1 conv == single MXU matmul (bf16 x bf16 -> f32 accumulate) + bias ----
    acc = jnp.dot(shifted, w_ref[...], preferred_element_type=jnp.float32)
    out_ref[...] = (acc + b_ref[...]).astype(out_ref.dtype)


def shift_conv1x1_pallas_nhwc(x_nhwc, w_oihw, bias, n_segment=3,
                              out_dtype=jnp.float32, tile_cout=128):
    """Channels-last entry point (preferred: no layout transposes)."""
    N, H, W, Cin = x_nhwc.shape
    Cout = w_oihw.shape[0]
    assert N % n_segment == 0, "bt must be a multiple of n_segment"
    T = n_segment
    nb = N // T
    HW = H * W
    fold = Cin // 3
    assert (T * HW) % 8 == 0, "T*H*W must be a multiple of 8 (sublane alignment)"

    Cin_p = _round_up(Cin, 128)
    Cout_p = _round_up(Cout, 128)
    tco = min(tile_cout, Cout_p)
    assert tco % 128 == 0 and Cout_p % tco == 0
    n_co = Cout_p // tco

    # Lane-dense rows [bt*H*W, Cin_p] in bf16.  Padded input channels are zero and meet
    # zero weight rows, so the result is unchanged.
    x = x_nhwc.astype(jnp.bfloat16).reshape(N * HW, Cin)
    if Cin_p != Cin:
        x = jnp.pad(x, ((0, 0), (0, Cin_p - Cin)))

    w = jnp.transpose(w_oihw.reshape(Cout, Cin), (1, 0)).astype(jnp.bfloat16)   # [Cin, Cout]
    w = jnp.pad(w, ((0, Cin_p - Cin), (0, Cout_p - Cout)))
    b = jnp.pad(bias.astype(jnp.float32), (0, Cout_p - Cout)).reshape(1, Cout_p)

    kern = functools.partial(shift_conv1x1_kernel, T=T, HW=HW, fold=fold)

    out = pl.pallas_call(
        kern,
        out_shape=jax.ShapeDtypeStruct((N * HW, Cout_p), out_dtype),
        grid=(nb, n_co),
        in_specs=[
            # Full temporal segment; block index is independent of the Cout axis, so the
            # activation block is not re-fetched across consecutive j steps.
            pl.BlockSpec((T * HW, Cin_p), lambda bk, j: (bk, 0)),
            pl.BlockSpec((Cin_p, tco), lambda bk, j: (0, j)),     # weight tile
            pl.BlockSpec((1, tco), lambda bk, j: (0, j)),         # bias tile (f32)
        ],
        out_specs=pl.BlockSpec((T * HW, tco), lambda bk, j: (bk, j)),
        compiler_params=pltpu.CompilerParams(
            dimension_semantics=("parallel", "parallel"),
            vmem_limit_bytes=_vmem_budget_bytes(T * HW, Cin_p, tco,
                                                jnp.dtype(out_dtype).itemsize),
        ),
    )(x, w, b)

    return out[:, :Cout].reshape(N, H, W, Cout)


def shift_conv1x1_pallas(x_nchw, w_oihw, bias, n_segment=3, out_dtype=jnp.float32):
    """NCHW compatibility shim for the PyTorch layout.

    Cast to bf16 BEFORE the transpose so the layout pass moves half the bytes.  In
    production keep activations NHWC end-to-end and call shift_conv1x1_pallas_nhwc
    directly to drop both transposes.
    """
    x_nhwc = jnp.transpose(x_nchw.astype(jnp.bfloat16), (0, 2, 3, 1))
    out_nhwc = shift_conv1x1_pallas_nhwc(x_nhwc, w_oihw, bias, n_segment=n_segment,
                                         out_dtype=out_dtype)
    return jnp.transpose(out_nhwc, (0, 3, 1, 2))


# ------------------------- pure-JAX reference (NCHW) -------------------------
def shift_conv1x1_ref(x, w, b, n_segment=3):
    """Reference of the PyTorch module.  x/w are pre-rounded to bf16 to mirror the
    kernel's deliberate bf16-operand / f32-accumulation precision choice, so this check
    isolates the shift + matmul + bias logic."""
    x = x.astype(jnp.bfloat16).astype(jnp.float32)
    w = w.astype(jnp.bfloat16).astype(jnp.float32)
    nt, c, h, wd = x.shape
    nb = nt // n_segment
    fold = c // 3
    x5 = x.reshape(nb, n_segment, c, h, wd)
    out = jnp.zeros_like(x5)
    out = out.at[:, :-1, :fold].set(x5[:, 1:, :fold])                  # shift left
    out = out.at[:, 1:, fold:2 * fold].set(x5[:, :-1, fold:2 * fold])  # shift right
    out = out.at[:, :, 2 * fold:].set(x5[:, :, 2 * fold:])             # no shift
    shifted = out.reshape(nt, c, h, wd)
    y = jax.lax.conv_general_dilated(
        shifted, w, window_strides=(1, 1), padding="VALID",
        dimension_numbers=("NCHW", "OIHW", "NCHW"),
        precision=jax.lax.Precision.HIGHEST)
    return y + b[None, :, None, None]


if __name__ == "__main__":
    key = jax.random.PRNGKey(0)
    n_segment = 3
    N, Cin, H, W = 6, 8, 16, 16          # bt = 6 = n_batch(2) * n_segment(3)
    Cout = 16

    k1, k2, k3 = jax.random.split(key, 3)
    x = jax.random.normal(k1, (N, Cin, H, W), jnp.float32)
    w = 0.1 * jax.random.normal(k2, (Cout, Cin, 1, 1), jnp.float32)
    b = 0.1 * jax.random.normal(k3, (Cout,), jnp.float32)

    out = shift_conv1x1_pallas(x, w, b, n_segment=n_segment)
    out = jax.block_until_ready(out)

    ref = shift_conv1x1_ref(x, w, b, n_segment=n_segment)
    err = float(jnp.max(jnp.abs(out - ref)))
    assert err < 2e-3, f"kernel/reference mismatch: max abs err = {err}"
    print("KERNEL_OK")
</pallas_src>

<mosaic_0001>
module attributes {stable_mosaic.version = 11 : i64} {
  func.func @shift_conv1x1_kernel(%arg0: i32, %arg1: i32, %arg2: memref<768x128xbf16, #tpu.memory_space<vmem>>, %arg3: memref<128x128xbf16, #tpu.memory_space<vmem>>, %arg4: memref<1x128xf32, #tpu.memory_space<vmem>>, %arg5: memref<768x128xf32, #tpu.memory_space<vmem>>) attributes {dimension_semantics = [#tpu.dimension_semantics<parallel>, #tpu.dimension_semantics<parallel>], iteration_bounds = array<i64: 2, 1>, scalar_prefetch = 0 : i64, scratch_operands = 0 : i64, tpu.core_type = #tpu.core_type<tc>, window_params = [{transform_indices = @transform_0, window_bounds = array<i64: 768, 128>}, {transform_indices = @transform_1, window_bounds = array<i64: 128, 128>}, {transform_indices = @transform_2, window_bounds = array<i64: 1, 128>}, {transform_indices = @transform_3, window_bounds = array<i64: 768, 128>}]} {
    %c0 = arith.constant 0 : index
    %c0_0 = arith.constant 0 : index
    %0 = vector.load %arg2[%c0, %c0_0] : memref<768x128xbf16, #tpu.memory_space<vmem>>, vector<768x128xbf16>
    %cst = arith.constant 0.000000e+00 : bf16
    %1 = vector.broadcast %cst : bf16 to vector<256x128xbf16>
    %2 = vector.extract_strided_slice %0 {offsets = [256, 0], sizes = [512, 128], strides = [1, 1]} : vector<768x128xbf16> to vector<512x128xbf16>
    %3 = tpu.concatenate %2, %1 in 0 : vector<512x128xbf16>, vector<256x128xbf16> -> vector<768x128xbf16>
    %4 = vector.extract_strided_slice %0 {offsets = [0, 0], sizes = [512, 128], strides = [1, 1]} : vector<768x128xbf16> to vector<512x128xbf16>
    %5 = tpu.concatenate %1, %4 in 0 : vector<256x128xbf16>, vector<512x128xbf16> -> vector<768x128xbf16>
    %6 = tpu.iota {dimensions = array<i32: 1>} : vector<768x128xi32>
    %c2_i32 = arith.constant 2 : i32
    %7 = vector.broadcast %c2_i32 : i32 to vector<768x128xi32>
    %8 = arith.cmpi slt, %6, %7 : vector<768x128xi32>
    %c4_i32 = arith.constant 4 : i32
    %9 = vector.broadcast %c4_i32 : i32 to vector<768x128xi32>
    %10 = arith.cmpi slt, %6, %9 : vector<768x128xi32>
    %11 = arith.select %10, %5, %0 : vector<768x128xi1>, vector<768x128xbf16>
    %12 = arith.select %8, %3, %11 : vector<768x128xi1>, vector<768x128xbf16>
    %c0_1 = arith.constant 0 : index
    %c0_2 = arith.constant 0 : index
    %13 = vector.load %arg3[%c0_1, %c0_2] : memref<128x128xbf16, #tpu.memory_space<vmem>>, vector<128x128xbf16>
    %cst_3 = arith.constant dense<0.000000e+00> : vector<768x128xf32>
    %14 = tpu.matmul %12, %13, %cst_3 {dimension_numbers = #tpu.dot_dimension_numbers<[1], [0], [0], [1], [0, 0, 1, 1], [], []>} : vector<768x128xbf16>, vector<128x128xbf16>, vector<768x128xf32> -> vector<768x128xf32>
    %c0_4 = arith.constant 0 : index
    %c0_5 = arith.constant 0 : index
    %15 = vector.load %arg4[%c0_4, %c0_5] : memref<1x128xf32, #tpu.memory_space<vmem>>, vector<1x128xf32>
    %16 = vector.broadcast %15 : vector<1x128xf32> to vector<768x128xf32>
    %17 = arith.addf %14, %16 : vector<768x128xf32>
    %c0_6 = arith.constant 0 : index
    %c0_7 = arith.constant 0 : index
    %18 = vector.load %arg5[%c0_6, %c0_7] : memref<768x128xf32, #tpu.memory_space<vmem>>, vector<768x128xf32>
    tpu.vector_store %arg5[%c0_6, %c0_7], %17 {strides = array<i32>} : memref<768x128xf32, #tpu.memory_space<vmem>>, vector<768x128xf32>,
    return
  }
  func.func @transform_0(%arg0: i32, %arg1: i32) -> (i32, i32) {
    %c0_i32 = arith.constant 0 : i32
    %c0_i32_0 = arith.constant 0 : i32
    return %arg0, %c0_i32 : i32, i32
  }
  func.func @transform_1(%arg0: i32, %arg1: i32) -> (i32, i32) {
    %c0_i32 = arith.constant 0 : i32
    %c0_i32_0 = arith.constant 0 : i32
    return %c0_i32, %arg1 : i32, i32
  }
  func.func @transform_2(%arg0: i32, %arg1: i32) -> (i32, i32) {
    %c0_i32 = arith.constant 0 : i32
    %c0_i32_0 = arith.constant 0 : i32
    return %c0_i32, %arg1 : i32, i32
  }
  func.func @transform_3(%arg0: i32, %arg1: i32) -> (i32, i32) {
    %c0_i32 = arith.constant 0 : i32
    return %arg0, %arg1 : i32, i32
  }
}

</mosaic_0001>

<bundles_post_ra>
// kernel: tpu_custom_call.1
= control target key start
LH: loop header
LB: loop body
LE: loop exit
PB: predicated region body
PF: predicated region fallthrough
CT: control target
= control target key end

     0   :  { %8 = vsyncpa [#allocation3], 0  ;;  %s2809_s0 = inlined_call_operand.hbm [shape: bf16[1536,128], index: 0, kind: input, shape index: {}]   ;;  %s2810_s1 = inlined_call_operand.hbm [shape: bf16[128,128], index: 1, kind: input, shape index: {}]   ;;  %s2811_s2 = inlined_call_operand.vmem [shape: f32[1,128], index: 2, kind: input, shape index: {}]   ;;  %s2812_s3 = inlined_call_operand.hbm [shape: f32[1536,128], index: 3, kind: output, shape index: {}]  }
   0x1   :  { %10 = vsyncpa [#allocation3 + $0x1], 0 }
   0x2   :  { %11 = vsyncpa [#allocation6], 0 }
   0x3   :  { %12 = vsyncpa [#allocation4], 0 }
   0x4   :  { %14 = vsyncpa [#allocation4 + $0x1], 0  ;;  %s2040_s12 = smov 0   ;;  %s2042_s13 = smov 0  }
   0x5   :  { %s2044_s14 = smov 0   ;;  %s2046_s15 = smov 0  }
   0x6   :  { %s2048_s16 = smov 0   ;;  %s2050_s17 = smov 0  }
   0x7 LB: > { %s1448_s18 = sadd.s32 4294967295, %s2010_s17   ;;  %s1449_s19 = sadd.s32 4294967294, %s2010_s17   ;;  %s2010_s17 = sphi %s2050_s17, %s20_s17   ;;  %s2006_s16 = sphi %s2048_s16, %s2830_s16   ;;  %s2002_s15 = sphi %s2046_s15, %s2829_s15   ;;  %s1998_s14 = sphi %s2044_s14, %s2828_s14   ;;  %s1994_s13 = sphi %s2042_s13, %s2827_s13   ;;  %s1990_s12 = sphi %s2040_s12, %s2826_s12  }
   0x8   : > { %p52_p0 = scmp.ne.s32.totalorder %s1994_s13, %s1990_s12  ;;  %p2074_p1 = scmp.eq.s32.totalorder %s1448_s18, 0 }
   0x9   : > { %p2078_p2 = scmp.eq.s32.totalorder %s1448_s18, 1  ;;  %p136_p3 = scmp.eq.s32.totalorder %s1449_s19, 1 }
   0xa   : > { %p2084_p4 = por %p2074_p1, %p52_p0  ;;  %p1450_p5 = scmp.ge.s32.totalorder %s2010_s17, 1 }
   0xb   : > { %p2089_p6 = por %p136_p3, %p52_p0  ;;  %p143_p7 = scmp.lt.s32.totalorder %s2010_s17, 3 }
   0xc   : > { %s2816_s22 = scalar_select %p2084_p4, 1, 0 }
   0xd   : > { %s2817_s23 = scalar_select %p2089_p6, 1, 0 }
   0xe   : > { %p2094_p8 = pnand %p1450_p5, %p143_p7  ;;  %s2012_s25 = smov [#allocation5]  }
   0xf   : > { %s157_s26 = sshll.u32 %s2012_s25, 4  ;;  %p1453_p10 = scmp.ge.s32.totalorder %s2010_s17, 2  ;;  %s158_s26 = int_to_ptr.vmem [resolvable:$true] %s157_s26 }
  0x10   : > { %p1746_p9 = pneg %p2094_p8  ;;  %s32_s28 = sadd.s32 1, %s2006_s16 }
  0x11   : > { %s1883_s29 = scalar_lea.vmem %s158_s26, 1024  ;;  %p1891_p5 = scmp.lt.s32.totalorder %s158_s26, %s158_s26 }
  0x12   : > { %p2103_p11 = pnand %p1746_p9, %p2074_p1  ;;  %p1884_p13 = scmp.ne.s32.totalorder %s158_s26, %s1883_s29 }
  0x13   : > { %p1892_p7 = scmp.lt.s32.totalorder %s1883_s29, %s1883_s29 }
  0x14   : > { %p1874_p12 = pneg %p2103_p11 }
  0x15   : > { %p1893_p6 = por %p1892_p7, %p1891_p5 }
  0x16   : > { %p1886_p0 = pnand %p1884_p13, %p1874_p12 }
  0x18   : > { %p1887_p3 = pneg %p1886_p0 }
  0x1a   : > { %p1894_p4 = pnand %p1893_p6, %p1887_p3 }
  0x1c   : > { %1897 = shalt.err (!%p1894_p4)
}
  0x1d   : > { %s2013_s30 = smov 64   ;;  %s2014_s4 = smov 4  }
  0x1e   : > { %1749 = dma.hbm_to_vmem [thread:$0]  (!%p2103_p11), %s2810_s1, 1024, %s158_s26, [#allocation6], %s2013_s30, %s2013_s30, %s2014_s4  }
  0x1f   : > { %p34_p4 = scmp.ge.s32.totalorder %s32_s28, 2  ;;  %s39_s7 = sadd.s32 1, %s1998_s14 }
  0x20   : > { %p46_p6 = scmp.ne.s32.totalorder %s1998_s14, %s1994_s13  ;;  %p47_p9 = scmp.eq.s32.totalorder %s2010_s17, 0 }
  0x21   : > { %s2832_s28 = smov (%p34_p4, %s32_s28), 0  ;;  %p1759_p0 = scmp.lt.s32.totalorder %s2010_s17, 2 }
  0x22   : > { %p48_p12 = por %p47_p9, %p46_p6  ;;  %p2126_p13 = por %p2078_p2, %p46_p6 }
  0x23   : > { %s36_s9 = ssub.s32 %s2006_s16, %s2832_s28  ;;  %s177_s10 = sand.u32 1, %s1998_s14  }
  0x24   : > { %p37_p3 = scmp.eq.s32.totalorder %s36_s9, 0  ;;  %s1735_s11 = smul.u32 384, %s177_s10 }
  0x25   : > { %s1549_s19 = smul.u32 6144, %s2006_s16  ;;  %p2138_p11 = pnand %p1759_p0, %p48_p12 }
  0x26   : > { %s2135_s18 = scalar_select %p37_p3, %s1998_s14, %s39_s7  }
  0x27   : > { %s181_s25 = scalar_lea.vmem [#allocation2], %s1735_s11  ;;  %s187_s5 = scalar_lea.hbm %s2809_s0, %s1549_s19 }
  0x28   : > { %s188_s26 = sshll.u32 %s181_s25, 4  ;;  %s178_s6 = scalar_lea.sflag [#allocation3], %s177_s10  ;;  %s189_s26 = int_to_ptr.vmem [resolvable:$true] %s188_s26 }
  0x29   : > { %p1900_p2 = pneg %p2138_p11  ;;  %s1911_s9 = scalar_lea.vmem %s189_s26, 6144 }
  0x2a   : > { %p1912_p5 = scmp.ne.s32.totalorder %s189_s26, %s1911_s9  ;;  %s2015_s7 = smov [#allocation2]  }
  0x2b   : > { %s1916_s11 = sshll.u32 %s2015_s7, 4  ;;  %s1917_s11 = int_to_ptr.vmem [resolvable:$false] %s1916_s11 }
  0x2c   : > { %p1914_p7 = pnand %p1912_p5, %p1900_p2  ;;  %s1918_s25 = scalar_lea.vmem %s1917_s11, 12288 }
  0x2d   : > { %p1919_p6 = scmp.lt.s32.totalorder %s189_s26, %s1917_s11  ;;  %p1920_p9 = scmp.lt.s32.totalorder %s1918_s25, %s1911_s9 }
  0x2e   : > { %p1915_p4 = pneg %p1914_p7 }
  0x2f   : > { %p1921_p12 = por %p1920_p9, %p1919_p6 }
  0x31   : > { %p1922_p0 = pnand %p1921_p12, %p1915_p4 }
  0x33   : > { %1925 = shalt.err (!%p1922_p0)
}
  0x34   : > { %1753 = dma.hbm_to_vmem [thread:$0]  (!%p2138_p11), %s187_s5, 6144, %s189_s26, %s178_s6, %s2013_s30, %s2013_s30, %s2014_s4  }
  0x35   : > { %200 = sbr.rel (%p2094_p8) target bundleno = 397 (0x18d), region = 32  ;;  %s2155_s10 = sand.u32 (!%p2094_p8), 1, %s1994_s13  }
  0x36   : > { %s1736_s19 = smul.u32 (!%p2094_p8), 384, %s2155_s10  ;;  %s203_s29 = scalar_lea.sflag (!%p2094_p8), [#allocation3], %s2155_s10 }
  0x37   : > { %p2822_p3 = scmp.ne.s32.totalorder (!%p2094_p8), %s2816_s22, 0 }
  0x38   : > { %s2159_s21 = scalar_lea.vmem (!%p2094_p8), [#allocation2], %s1736_s19 }
  0x3a   : > { %1977 = dma.done.wait (%p2822_p3), %s203_s29, 6144  }
  0x3b   : > { %1979 = vsyncadd (%p2822_p3), %s203_s29, 4294961152 }
  0x3c   : > { %1981 = dma.done.wait (%p2074_p1), [#allocation6], 1024  }
  0x3d   : > { %1983 = vsyncadd (%p2074_p1), [#allocation6], 4294966272  ;;  %v628_v0 = vlaneseq  ;;  %v1816_v4 = vld [vmem:[#allocation5 + $0x38] sm:$0xff]   ;;  %v2016_v5 = vmov 0   ;;  %v1817_v7 = vld [vmem:[#allocation5 + $0x30] sm:$0xff]   ;;  %s1737_s20 = smul.u32 768, %s2155_s10 }
  0x3e   : > { %1607 = vmatprep.subr.bf16.mxu0 %v1816_v4  ;;  %1719 = vmatprep.subr.bf16.mxu1 %v1816_v4  ;;  %v1818_v10 = vld [vmem:[#allocation5 + $0x28] sm:$0xff]   ;;  %v1819_v12 = vld [vmem:[#allocation5 + $0x20] sm:$0xff]   ;;  %v1820_v15 = vld [vmem:[#allocation5 + $0x18] sm:$0xff]   ;;  %s1550_s4 = smul.u32 12288, %s2002_s15  ;;  %s1327_s6 = scalar_lea.sflag [#allocation4], %s2155_s10 }
  0x3f   : > { %v629_v1 = vand.u32 127, %v628_v0  ;;  %v635_v2 = vshrl.u32 %v628_v0, 7  ;;  %1608 = vmatpush3.bf16.msra.mxu0 %v1816_v4  ;;  %1727 = vmatpush3.bf16.msra.mxu1 %v1816_v4  ;;  %v2175_v13 = vld [vmem:[%s2159_s21 + $0x80] sm:$0xff]   ;;  %v2201_v23 = vld [vmem:[%s2159_s21 + $0x88] sm:$0xff]   ;;  %v1821_v27 = vld [vmem:[#allocation5 + $0x10] sm:$0xff]   ;;  %s2562_s30 = scalar_lea.vmem [#allocation7], %s1737_s20 }
  0x40   : > { %1609 = vmatprep.subr.bf16.mxu0 %v1817_v7  ;;  %1720 = vmatprep.subr.bf16.mxu1 %v1817_v7  ;;  %v1825_v14 = vld [vmem:[%s2159_s21] sm:$0xff]   ;;  %v1830_v24 = vld [vmem:[%s2159_s21 + $0x8] sm:$0xff]   ;;  %v2221_v32 = vld [vmem:[%s2159_s21 + $0x90] sm:$0xff]   ;;  %s1341_s26 = sshll.u32 %s2562_s30, 4  ;;  %s2753_s5 = scalar_lea.hbm %s2812_s3, %s1550_s4  ;;  %s2755_s26 = int_to_ptr.vmem [resolvable:$true] %s1341_s26 }
  0x41   : > { %vm630_vm0 = vcmp.lt.s32.totalorder %v629_v1, 2  ;;  %vm631_vm1 = vcmp.lt.s32.totalorder %v629_v1, 4  ;;  %v636_v3 = vsub.s32 0, %v635_v2  ;;  %v2182_v17 = vld [vmem:[%s2159_s21 + $0xc0] sm:$0xff]   ;;  %v2217_v29 = vld [vmem:[%s2159_s21 + $0xc8] sm:$0xff]   ;;  %v1835_v33 = vld [vmem:[%s2159_s21 + $0x10] sm:$0xff]  }
  0x42   : > { %vm632_vm2 = vmpackc.low %vm631_vm1, %vm631_vm1  ;;  %v1827_v20 = vld [vmem:[%s2159_s21 + $0x140] sm:$0xff]   ;;  %v1832_v30 = vld [vmem:[%s2159_s21 + $0x148] sm:$0xff]   ;;  %s1926_s9 = scalar_lea.vmem %s2755_s26, 12288  ;;  %s2017_s7 = smov [#allocation7]  }
  0x43   : > { %vm687_vm3 = vmpackc.low %vm630_vm0, %vm630_vm0  ;;  %v633_v6 = vsel %vm632_vm2, 65537, %v2016_v5  ;;  %1610 = vmatpush3.bf16.msra.mxu0 %v1817_v7  ;;  %1728 = vmatpush3.bf16.msra.mxu1 %v1817_v7  ;;  %v2194_v21 = vld [vmem:[%s2159_s21 + $0x40] sm:$0xff]   ;;  %v1822_v31 = vld [vmem:[#allocation5 + $0x8] sm:$0xff]   ;;  %p1927_p1 = scmp.ne.s32.totalorder %s2755_s26, %s1926_s9  ;;  %s1930_s11 = sshll.u32 %s2017_s7, 4  ;;  %s1931_s11 = int_to_ptr.vmem [resolvable:$false] %s1930_s11 }
  0x44   : > { %v688_v8 = vsel %vm687_vm3, 65537, %v2016_v5  ;;  %v2169_v9 = vrot.slane %v633_v6, %v636_v3  ;;  %1611 = vmatprep.subr.bf16.mxu0 %v1818_v10  ;;  %1721 = vmatprep.subr.bf16.mxu1 %v1818_v10  ;;  %v1823_v36 = vld [vmem:[#allocation5] sm:$0xff]   ;;  %v2235_v37 = vld [vmem:[%s2159_s21 + $0x48] sm:$0xff]   ;;  %v2238_v38 = vld [vmem:[%s2159_s21 + $0xd0] sm:$0xff]   ;;  %s1932_s25 = scalar_lea.vmem %s1931_s11, 24576  ;;  %p1933_p2 = scmp.lt.s32.totalorder %s2755_s26, %s1931_s11 }
  0x45   : > { %v2171_v11 = vrot.slane %v688_v8, %v636_v3  ;;  %v1837_v39 = vld [vmem:[%s2159_s21 + $0x150] sm:$0xff]   ;;  %v2245_v41 = vld [vmem:[%s2159_s21 + $0x98] sm:$0xff]   ;;  %v2275_v51 = vld [vmem:[%s2159_s21 + $0xa0] sm:$0xff]   ;;  %p1928_p8 = pnand %p1927_p1, %p2126_p13  ;;  %p1934_p5 = scmp.lt.s32.totalorder %s1932_s25, %s1926_s9 }
  0x46   : > { %vm638_vm4 = vcmp.ne.s16.totalorder %v2169_v9, 0  ;;  %v2242_v40 = vld [vmem:[%s2159_s21 + $0x50] sm:$0xff]   ;;  %v1840_v42 = vld [vmem:[%s2159_s21 + $0x18] sm:$0xff]   ;;  %v1845_v52 = vld [vmem:[%s2159_s21 + $0x20] sm:$0xff]  }
  0x47   : > { %vm693_vm5 = vcmp.ne.s16.totalorder %v2171_v11, 0  ;;  %1612 = vmatpush3.bf16.msra.mxu0 %v1818_v10  ;;  %1729 = vmatpush3.bf16.msra.mxu1 %v1818_v10  ;;  %v639_v16 = vsel %vm638_vm4, 0, %v1825_v14  ;;  %v2187_v18 = vsel %vm638_vm4, %v1825_v14, %v2175_v13  ;;  %v663_v22 = vsel %vm638_vm4, %v2194_v21, %v2182_v17  ;;  %v2261_v46 = vld [vmem:[%s2159_s21 + $0xd8] sm:$0xff]   ;;  %v2292_v57 = vld [vmem:[%s2159_s21 + $0xe0] sm:$0xff]   ;;  %v2309_v63 = vld [vmem:[%s2159_s21 + $0xa8] sm:$0xff]   ;;  %p1929_p11 = pneg %p1928_p8  ;;  %p1935_p7 = por %p1934_p5, %p1933_p2 }
  0x48   : > { %1613 = vmatprep.subr.bf16.mxu0 %v1819_v12  ;;  %1722 = vmatprep.subr.bf16.mxu1 %v1819_v12  ;;  %v694_v19 = vsel %vm693_vm5, %v2175_v13, %v639_v16  ;;  %v2207_v25 = vsel %vm638_vm4, %v2182_v17, %v1827_v20  ;;  %v718_v26 = vsel %vm693_vm5, %v1827_v20, %v663_v22  ;;  %v640_v45 = vsel %vm638_vm4, 0, %v1830_v24  ;;  %v1842_v47 = vld [vmem:[%s2159_s21 + $0x158] sm:$0xff]   ;;  %v1847_v61 = vld [vmem:[%s2159_s21 + $0x160] sm:$0xff]   ;;  %v1850_v0 = vld [vmem:[%s2159_s21 + $0x28] sm:$0xff]  }
  0x49   : > { %1623 = vmatprep.mubr.bf16.mxu0 %v694_v19  ;;  %v2214_v28 = vsel %vm638_vm4, %v1830_v24, %v2201_v23  ;;  %1671 = vmatprep.mubr.bf16.mxu1 %v718_v26  ;;  %v2227_v34 = vsel %vm638_vm4, %v2217_v29, %v1832_v30  ;;  %v2232_v35 = vsel %vm638_vm4, %v1835_v33, %v2221_v32  ;;  %v641_v49 = vsel %vm638_vm4, 0, %v1835_v33  ;;  %v2284_v54 = vld [vmem:[%s2159_s21 + $0x58] sm:$0xff]   ;;  %v2306_v62 = vld [vmem:[%s2159_s21 + $0x60] sm:$0xff]   ;;  %v1851_v4 = vld [vmem:[%s2159_s21 + $0xe8] sm:$0xff]   ;;  %p1936_p4 = pnand %p1935_p7, %p1929_p11 }
  0x4a   : > { %v2251_v43 = vsel %vm638_vm4, %v2238_v38, %v1837_v39  ;;  %v2256_v44 = vsel %vm638_vm4, %v1840_v42, %v2245_v41  ;;  %v664_v48 = vsel %vm638_vm4, %v2235_v37, %v2217_v29  ;;  %v665_v50 = vsel %vm638_vm4, %v2242_v40, %v2238_v38  ;;  %v1852_v8 = vld [vmem:[%s2159_s21 + $0x168] sm:$0xff]   ;;  %v1855_v16 = vld [vmem:[%s2159_s21 + $0x30] sm:$0xff]   ;;  %vm2455_vm6 = vmneg %vm693_vm5 }
  0x4b   : > { %1614 = vmatpush3.bf16.msra.mxu0 %v1819_v12  ;;  %1730 = vmatpush3.bf16.msra.mxu1 %v1819_v12  ;;  %v2281_v53 = vsel %vm638_vm4, %v2261_v46, %v1842_v47  ;;  %v695_v55 = vsel %vm693_vm5, %v2201_v23, %v640_v45  ;;  %v719_v56 = vsel %vm693_vm5, %v1832_v30, %v664_v48  ;;  %v642_v2 = vsel %vm638_vm4, 0, %v1840_v42  ;;  %v1853_v10 = vld [vmem:[%s2159_s21 + $0x68] sm:$0xff]   ;;  %v1857_v33 = vld [vmem:[%s2159_s21 + $0x170] sm:$0xff]   ;;  %v2374_v45 = vld [vmem:[%s2159_s21 + $0xb8] sm:$0xff]  }
  0x4c   : > { %1615 = vmatprep.subr.bf16.mxu0 %v1820_v15  ;;  %1723 = vmatprep.subr.bf16.mxu1 %v1820_v15  ;;  %v2297_v58 = vsel %vm638_vm4, %v1845_v52, %v2275_v51  ;;  %v696_v59 = vsel %vm693_vm5, %v2221_v32, %v641_v49  ;;  %v720_v60 = vsel %vm693_vm5, %v1837_v39, %v665_v50  ;;  %v643_v6 = vsel %vm638_vm4, 0, %v1845_v52  ;;  %v2558_v9 = vld [vmem:[%s2811_s2] ss:$0 sm:$0xff] }
  0x4d   : > { %v2315_v1 = vsel %vm638_vm4, %v2292_v57, %v1847_v61  ;;  %v666_v3 = vsel %vm638_vm4, %v2284_v54, %v2261_v46  ;;  %v2327_v5 = vsel %vm638_vm4, %v1850_v0, %v2309_v63  ;;  %v667_v7 = vsel %vm638_vm4, %v2306_v62, %v2292_v57 }
  0x4e   : > { %v697_v12 = vsel %vm693_vm5, %v2245_v41, %v642_v2  ;;  %v721_v14 = vsel %vm693_vm5, %v1842_v47, %v666_v3  ;;  %v652_v19 = vsel %vm638_vm4, 0, %v1853_v10  ;;  %v2350_v20 = vsel %vm638_vm4, %v1851_v4, %v1852_v8  ;;  %v1860_v47 = vld [vmem:[%s2159_s21 + $0x38] sm:$0xff]  }
  0x4f   : > { %1616 = vmatpush3.bf16.msra.mxu0 %v1820_v15  ;;  %1731 = vmatpush3.bf16.msra.mxu1 %v1820_v15  ;;  %v2343_v15 = vld [vmem:[%s2159_s21 + $0xb0] sm:$0xff]   ;;  %v698_v22 = vsel %vm693_vm5, %v2275_v51, %v643_v6  ;;  %v722_v24 = vsel %vm693_vm5, %v1847_v61, %v667_v7  ;;  %v2359_v26 = vsel %vm693_vm5, %v1851_v4, %v652_v19  ;;  %v645_v42 = vsel %vm638_vm4, 0, %v1855_v16  ;;  %v1862_v61 = vld [vmem:[%s2159_s21 + $0x178] sm:$0xff]  }
  0x50   : > { %1617 = vmatprep.subr.bf16.mxu0 %v1821_v27  ;;  %1724 = vmatprep.subr.bf16.mxu1 %v1821_v27  ;;  %v661_v30 = vsel %vm638_vm4, %v1855_v16, %v2343_v15  ;;  %v668_v39 = vsel %vm638_vm4, %v1853_v10, %v1851_v4  ;;  %v700_v2 = vsel %vm693_vm5, %v2343_v15, %v645_v42  ;;  %v1864_v4 = vld [vmem:[%s2159_s21 + $0x100] sm:$0xff]   ;;  %v646_v16 = vsel %vm638_vm4, 0, %v1860_v47  ;;  %v1870_v42 = vld [vmem:[%s2159_s21 + $0x130] sm:$0xff]  }
  0x51   : > { %v677_v11 = vsel %vm638_vm4, %v2343_v15, %v1870_v42 }
  0x53   : > { %1618 = vmatpush3.bf16.msra.mxu0 %v1821_v27  ;;  %1732 = vmatpush3.bf16.msra.mxu1 %v1821_v27  ;;  %v1856_v27 = vld [vmem:[%s2159_s21 + $0xf0] sm:$0xff]  }
  0x54   : > { %1619 = vmatprep.subr.bf16.mxu0 %v1822_v31  ;;  %1725 = vmatprep.subr.bf16.mxu1 %v1822_v31  ;;  %v2381_v49 = vsel %vm638_vm4, %v1856_v27, %v1857_v33 }
  0x57   : > { %1620 = vmatpush3.bf16.msra.mxu0 %v1822_v31  ;;  %1733 = vmatpush3.bf16.msra.mxu1 %v1822_v31  ;;  %v644_v31 = vsel %vm638_vm4, 0, %v1850_v0  ;;  %v1863_v0 = vld [vmem:[%s2159_s21 + $0x78] sm:$0xff]  }
  0x58   : > { %1621 = vmatprep.subr.bf16.mxu0 %v1823_v36  ;;  %1726 = vmatprep.subr.bf16.mxu1 %v1823_v36  ;;  %v654_v6 = vsel %vm638_vm4, 0, %v1863_v0 }
  0x5b   : > { %1622 = vmatpush3.bf16.msra.mxu0 %v1823_v36  ;;  %1734 = vmatpush3.bf16.msra.mxu1 %v1823_v36  ;;  %v1858_v36 = vld [vmem:[%s2159_s21 + $0x70] sm:$0xff]  }
  0x5c   : > { %v653_v48 = vsel %vm638_vm4, 0, %v1858_v36  ;;  %v669_v50 = vsel %vm638_vm4, %v1858_v36, %v1856_v27 }
  0x5d   : > { %v2387_v52 = vsel %vm693_vm5, %v1856_v27, %v653_v48  ;;  %v724_v3 = vsel %vm693_vm5, %v1857_v33, %v669_v50  ;;  %v647_v27 = vsel %vm638_vm4, 0, %v2194_v21  ;;  %v1869_v33 = vld [vmem:[%s2159_s21 + $0x128] sm:$0xff]   ;;  %v1871_v48 = vld [vmem:[%s2159_s21 + $0x138] sm:$0xff]  }
  0x5e   : > { %1624 = vmatmul.mubr.bf16.vlgmr.msra.gmra.mxu0 %v695_v55  ;;  %1672 = vmatmul.mubr.bf16.vlgmr.msra.gmra.mxu1 %v719_v56  ;;  %v1861_v55 = vld [vmem:[%s2159_s21 + $0xf8] sm:$0xff]   ;;  %v662_v56 = vsel %vm638_vm4, %v1860_v47, %v2374_v45  ;;  %v715_v50 = vsel %vm693_vm5, %v1869_v33, %v2327_v5  ;;  %v649_v5 = vsel %vm638_vm4, 0, %v2242_v40 }
  0x5f   : > { %1627 = vmatprep.mubr.bf16.mxu0 %v696_v59  ;;  %1675 = vmatprep.mubr.bf16.mxu1 %v720_v60  ;;  %v699_v59 = vsel %vm693_vm5, %v2309_v63, %v644_v31  ;;  %v723_v60 = vsel %vm693_vm5, %v1852_v8, %v668_v39  ;;  %v2410_v7 = vsel %vm638_vm4, %v1861_v55, %v1862_v61  ;;  %v1865_v8 = vld [vmem:[%s2159_s21 + $0x108] sm:$0xff]   ;;  %v1868_v31 = vld [vmem:[%s2159_s21 + $0x120] sm:$0xff]  }
  0x60   : > { %v709_v10 = vsel %vm693_vm5, %v1861_v55, %v654_v6  ;;  %v670_v19 = vsel %vm638_vm4, %v1863_v0, %v1861_v55  ;;  %v701_v39 = vsel %vm693_vm5, %v2374_v45, %v646_v16  ;;  %v714_v21 = vsel %vm693_vm5, %v1868_v31, %v2297_v58 }
  0x61   : > { %v716_v58 = vsel %vm693_vm5, %v1870_v42, %v661_v30  ;;  %v672_v55 = vsel %vm638_vm4, %v2201_v23, %v1865_v8  ;;  %v650_v23 = vsel %vm638_vm4, 0, %v2284_v54  ;;  %v675_v54 = vsel %vm638_vm4, %v2275_v51, %v1868_v31 }
  0x66   : > { %1628 = vmatmul.mubr.bf16.gmra.mxu0 %v697_v12  ;;  %1676 = vmatmul.mubr.bf16.gmra.mxu1 %v721_v14  ;;  %v1866_v12 = vld [vmem:[%s2159_s21 + $0x110] sm:$0xff]   ;;  %v710_v14 = vsel %vm693_vm5, %v1864_v4, %v2187_v18 }
  0x67   : > { %1631 = vmatprep.mubr.bf16.mxu0 %v698_v22  ;;  %1679 = vmatprep.mubr.bf16.mxu1 %v722_v24  ;;  %v1867_v22 = vld [vmem:[%s2159_s21 + $0x118] sm:$0xff]   ;;  %v711_v24 = vsel %vm693_vm5, %v1865_v8, %v2214_v28  ;;  %v712_v18 = vsel %vm693_vm5, %v1866_v12, %v2232_v35  ;;  %v725_v28 = vsel %vm693_vm5, %v1862_v61, %v670_v19 }
  0x68   : > { %v713_v36 = vsel %vm693_vm5, %v1867_v22, %v2256_v44  ;;  %v702_v35 = vsel %vm693_vm5, %v2182_v17, %v647_v27  ;;  %v671_v44 = vsel %vm638_vm4, %v2175_v13, %v1864_v4  ;;  %v717_v17 = vsel %vm693_vm5, %v1871_v48, %v662_v56 }
  0x69   : > { %v648_v13 = vsel %vm638_vm4, 0, %v2235_v37  ;;  %v704_v56 = vsel %vm693_vm5, %v2238_v38, %v649_v5  ;;  %v673_v37 = vsel %vm638_vm4, %v2221_v32, %v1866_v12  ;;  %v705_v32 = vsel %vm693_vm5, %v2261_v46, %v650_v23 }
  0x6a   : > { %v703_v30 = vsel %vm693_vm5, %v2217_v29, %v648_v13  ;;  %v651_v29 = vsel %vm638_vm4, 0, %v2306_v62  ;;  %v674_v38 = vsel %vm638_vm4, %v2245_v41, %v1867_v22  ;;  %v676_v41 = vsel %vm638_vm4, %v2309_v63, %v1869_v33 }
  0x6b   : > { %v706_v40 = vsel %vm693_vm5, %v2292_v57, %v651_v29  ;;  %v678_v46 = vsel %vm638_vm4, %v2374_v45, %v1871_v48 }
  0x6e   : > { %1632 = vmatmul.mubr.bf16.gmra.mxu0 %v699_v59  ;;  %1680 = vmatmul.mubr.bf16.gmra.mxu1 %v723_v60 }
  0x6f   : > { %1635 = vmatprep.mubr.bf16.mxu0 %v700_v2  ;;  %1683 = vmatprep.mubr.bf16.mxu1 %v724_v3 }
  0x76   : > { %1636 = vmatmul.mubr.bf16.gmra.mxu0 %v701_v39  ;;  %1684 = vmatmul.mubr.bf16.gmra.mxu1 %v725_v28 }
  0x77   : > { %1639 = vmatprep.mubr.bf16.mxu0 %v702_v35  ;;  %1687 = vmatprep.mubr.msk.bf16.mxu1 %vm2455_vm6, %v671_v44 }
  0x7e   : > { %1640 = vmatmul.mubr.bf16.gmra.mxu0 %v703_v30  ;;  %1688 = vmatmul.mubr.msk.bf16.gmra.mxu1 %vm2455_vm6, %v672_v55 }
  0x7f   : > { %1643 = vmatprep.mubr.bf16.mxu0 %v704_v56  ;;  %1691 = vmatprep.mubr.msk.bf16.mxu1 %vm2455_vm6, %v673_v37 }
  0x86   : > { %1644 = vmatmul.mubr.bf16.gmra.mxu0 %v705_v32  ;;  %1692 = vmatmul.mubr.msk.bf16.gmra.mxu1 %vm2455_vm6, %v674_v38 }
  0x87   : > { %1647 = vmatprep.mubr.bf16.mxu0 %v706_v40  ;;  %1695 = vmatprep.mubr.msk.bf16.mxu1 %vm2455_vm6, %v675_v54 }
  0x8e   : > { %1648 = vmatmul.mubr.bf16.gmra.mxu0 %v2359_v26  ;;  %1696 = vmatmul.mubr.msk.bf16.gmra.mxu1 %vm2455_vm6, %v676_v41 }
  0x8f   : > { %1651 = vmatprep.mubr.bf16.mxu0 %v2387_v52  ;;  %1699 = vmatprep.mubr.msk.bf16.mxu1 %vm2455_vm6, %v677_v11 }
  0x96   : > { %1652 = vmatmul.mubr.bf16.gmra.mxu0 %v709_v10  ;;  %1700 = vmatmul.mubr.msk.bf16.gmra.mxu1 %vm2455_vm6, %v678_v46 }
  0x97   : > { %1655 = vmatprep.mubr.bf16.mxu0 %v710_v14  ;;  %1703 = vmatprep.mubr.msk.bf16.mxu1 %vm2455_vm6, %v2207_v25 }
  0x9e   : > { %1656 = vmatmul.mubr.bf16.gmra.mxu0 %v711_v24  ;;  %1704 = vmatmul.mubr.msk.bf16.gmra.mxu1 %vm2455_vm6, %v2227_v34 }
  0x9f   : > { %1659 = vmatprep.mubr.bf16.mxu0 %v712_v18  ;;  %1707 = vmatprep.mubr.msk.bf16.mxu1 %vm2455_vm6, %v2251_v43 }
  0xa6   : > { %1660 = vmatmul.mubr.bf16.gmra.mxu0 %v713_v36  ;;  %1708 = vmatmul.mubr.msk.bf16.gmra.mxu1 %vm2455_vm6, %v2281_v53 }
  0xa7   : > { %1663 = vmatprep.mubr.bf16.mxu0 %v714_v21  ;;  %1711 = vmatprep.mubr.msk.bf16.mxu1 %vm2455_vm6, %v2315_v1 }
  0xae   : > { %1664 = vmatmul.mubr.bf16.gmra.mxu0 %v715_v50  ;;  %1712 = vmatmul.mubr.msk.bf16.gmra.mxu1 %vm2455_vm6, %v2350_v20 }
  0xaf   : > { %1667 = vmatprep.mubr.bf16.mxu0 %v716_v58  ;;  %1715 = vmatprep.mubr.msk.bf16.mxu1 %vm2455_vm6, %v2381_v49 }
  0xb6   : > { %1668 = vmatmul.mubr.bf16.gmra.mxu0 %v717_v17  ;;  %1716 = vmatmul.mubr.msk.bf16.gmra.mxu1 %vm2455_vm6, %v2410_v7 }
 0x11e   : > { %v1625_v25 = vpop.f32.mrf.mxu0  ;;  %v1673_v34 = vpop.f32.mrf.mxu1 }
 0x11f   : > { %v856_v43 = vadd.f32 %v1625_v25, %v2558_v9  ;;  %v1048_v51 = vadd.f32 %v1673_v34, %v2558_v9 }
 0x120   : > { %v847_v53 = vpop.f32.mrf.mxu0  ;;  %v1039_v57 = vpop.f32.mrf.mxu1 }
 0x121   : > { %1232 = vst [vmem:[%s2562_s30 + $0x10] sm:$0xff] %v856_v43  ;;  %1280 = vst [vmem:[%s2562_s30 + $0x190] sm:$0xff] %v1048_v51  ;;  %v848_v62 = vadd.f32 %v2558_v9, %v847_v53  ;;  %v1040_v63 = vadd.f32 %v2558_v9, %v1039_v57 }
 0x122   : > { %v1626_v1 = vpop.f32.mrf.mxu0  ;;  %v1674_v15 = vpop.f32.mrf.mxu1 }
 0x123   : > { %1230 = vst [vmem:[%s2562_s30] sm:$0xff] %v848_v62  ;;  %1278 = vst [vmem:[%s2562_s30 + $0x180] sm:$0xff] %v1040_v63  ;;  %v859_v20 = vadd.f32 %v1626_v1, %v2558_v9  ;;  %v1051_v26 = vadd.f32 %v1674_v15, %v2558_v9 }
 0x124   : > { %v850_v45 = vpop.f32.mrf.mxu0  ;;  %v1042_v49 = vpop.f32.mrf.mxu1 }
 0x125   : > { %1233 = vst [vmem:[%s2562_s30 + $0x18] sm:$0xff] %v859_v20  ;;  %1281 = vst [vmem:[%s2562_s30 + $0x198] sm:$0xff] %v1051_v26  ;;  %v851_v52 = vadd.f32 %v2558_v9, %v850_v45  ;;  %v1043_v59 = vadd.f32 %v2558_v9, %v1042_v49 }
 0x126   : > { %v1629_v60 = vpop.f32.mrf.mxu0  ;;  %v1677_v61 = vpop.f32.mrf.mxu1 }
 0x127   : > { %1231 = vst [vmem:[%s2562_s30 + $0x8] sm:$0xff] %v851_v52  ;;  %1279 = vst [vmem:[%s2562_s30 + $0x188] sm:$0xff] %v1043_v59  ;;  %v872_v0 = vadd.f32 %v1629_v60, %v2558_v9  ;;  %v1064_v2 = vadd.f32 %v1677_v61, %v2558_v9 }
 0x128   : > { %v863_v3 = vpop.f32.mrf.mxu0  ;;  %v1055_v4 = vpop.f32.mrf.mxu1 }
 0x129   : > { %1236 = vst [vmem:[%s2562_s30 + $0x30] sm:$0xff] %v872_v0  ;;  %1284 = vst [vmem:[%s2562_s30 + $0x1b0] sm:$0xff] %v1064_v2  ;;  %v864_v6 = vadd.f32 %v2558_v9, %v863_v3  ;;  %v1056_v7 = vadd.f32 %v2558_v9, %v1055_v4 }
 0x12a   : > { %v1630_v8 = vpop.f32.mrf.mxu0  ;;  %v1678_v10 = vpop.f32.mrf.mxu1 }
 0x12b   : > { %1234 = vst [vmem:[%s2562_s30 + $0x20] sm:$0xff] %v864_v6  ;;  %1282 = vst [vmem:[%s2562_s30 + $0x1a0] sm:$0xff] %v1056_v7  ;;  %v875_v12 = vadd.f32 %v1630_v8, %v2558_v9  ;;  %v1067_v14 = vadd.f32 %v1678_v10, %v2558_v9 }
 0x12c   : > { %v866_v16 = vpop.f32.mrf.mxu0  ;;  %v1058_v19 = vpop.f32.mrf.mxu1 }
 0x12d   : > { %1237 = vst [vmem:[%s2562_s30 + $0x38] sm:$0xff] %v875_v12  ;;  %1285 = vst [vmem:[%s2562_s30 + $0x1b8] sm:$0xff] %v1067_v14  ;;  %v867_v22 = vadd.f32 %v2558_v9, %v866_v16  ;;  %v1059_v24 = vadd.f32 %v2558_v9, %v1058_v19 }
 0x12e   : > { %v1633_v27 = vpop.f32.mrf.mxu0  ;;  %v1681_v31 = vpop.f32.mrf.mxu1 }
 0x12f   : > { %1235 = vst [vmem:[%s2562_s30 + $0x28] sm:$0xff] %v867_v22  ;;  %1283 = vst [vmem:[%s2562_s30 + $0x1a8] sm:$0xff] %v1059_v24  ;;  %v888_v18 = vadd.f32 %v1633_v27, %v2558_v9  ;;  %v1080_v33 = vadd.f32 %v1681_v31, %v2558_v9 }
 0x130   : > { %v879_v36 = vpop.f32.mrf.mxu0  ;;  %v1071_v39 = vpop.f32.mrf.mxu1 }
 0x131   : > { %1240 = vst [vmem:[%s2562_s30 + $0x50] sm:$0xff] %v888_v18  ;;  %1288 = vst [vmem:[%s2562_s30 + $0x1d0] sm:$0xff] %v1080_v33  ;;  %v880_v28 = vadd.f32 %v2558_v9, %v879_v36  ;;  %v1072_v42 = vadd.f32 %v2558_v9, %v1071_v39 }
 0x132   : > { %v1634_v21 = vpop.f32.mrf.mxu0  ;;  %v1682_v35 = vpop.f32.mrf.mxu1 }
 0x133   : > { %1238 = vst [vmem:[%s2562_s30 + $0x40] sm:$0xff] %v880_v28  ;;  %1286 = vst [vmem:[%s2562_s30 + $0x1c0] sm:$0xff] %v1072_v42  ;;  %v891_v44 = vadd.f32 %v1634_v21, %v2558_v9  ;;  %v1083_v47 = vadd.f32 %v1682_v35, %v2558_v9 }
 0x134   : > { %v882_v48 = vpop.f32.mrf.mxu0  ;;  %v1074_v50 = vpop.f32.mrf.mxu1 }
 0x135   : > { %1241 = vst [vmem:[%s2562_s30 + $0x58] sm:$0xff] %v891_v44  ;;  %1289 = vst [vmem:[%s2562_s30 + $0x1d8] sm:$0xff] %v1083_v47  ;;  %v883_v58 = vadd.f32 %v2558_v9, %v882_v48  ;;  %v1075_v17 = vadd.f32 %v2558_v9, %v1074_v50 }
 0x136   : > { %v1637_v13 = vpop.f32.mrf.mxu0  ;;  %v1685_v5 = vpop.f32.mrf.mxu1 }
 0x137   : > { %1239 = vst [vmem:[%s2562_s30 + $0x48] sm:$0xff] %v883_v58  ;;  %1287 = vst [vmem:[%s2562_s30 + $0x1c8] sm:$0xff] %v1075_v17  ;;  %v904_v30 = vadd.f32 %v1637_v13, %v2558_v9  ;;  %v1096_v55 = vadd.f32 %v1685_v5, %v2558_v9 }
 0x138   : > { %v895_v56 = vpop.f32.mrf.mxu0  ;;  %v1087_v37 = vpop.f32.mrf.mxu1 }
 0x139   : > { %1244 = vst [vmem:[%s2562_s30 + $0x70] sm:$0xff] %v904_v30  ;;  %1292 = vst [vmem:[%s2562_s30 + $0x1f0] sm:$0xff] %v1096_v55  ;;  %v896_v23 = vadd.f32 %v2558_v9, %v895_v56  ;;  %v1088_v29 = vadd.f32 %v2558_v9, %v1087_v37 }
 0x13a   : > { %v1638_v32 = vpop.f32.mrf.mxu0  ;;  %v1686_v38 = vpop.f32.mrf.mxu1 }
 0x13b   : > { %1242 = vst [vmem:[%s2562_s30 + $0x60] sm:$0xff] %v896_v23  ;;  %1290 = vst [vmem:[%s2562_s30 + $0x1e0] sm:$0xff] %v1088_v29  ;;  %v907_v40 = vadd.f32 %v1638_v32, %v2558_v9  ;;  %v1099_v54 = vadd.f32 %v1686_v38, %v2558_v9 }
 0x13c   : > { %v898_v41 = vpop.f32.mrf.mxu0  ;;  %v1090_v11 = vpop.f32.mrf.mxu1 }
 0x13d   : > { %1245 = vst [vmem:[%s2562_s30 + $0x78] sm:$0xff] %v907_v40  ;;  %1293 = vst [vmem:[%s2562_s30 + $0x1f8] sm:$0xff] %v1099_v54  ;;  %v899_v46 = vadd.f32 %v2558_v9, %v898_v41  ;;  %v1091_v25 = vadd.f32 %v2558_v9, %v1090_v11 }
 0x13e   : > { %v1641_v34 = vpop.f32.mrf.mxu0  ;;  %v1689_v43 = vpop.f32.mrf.mxu1 }
 0x13f   : > { %1243 = vst [vmem:[%s2562_s30 + $0x68] sm:$0xff] %v899_v46  ;;  %1291 = vst [vmem:[%s2562_s30 + $0x1e8] sm:$0xff] %v1091_v25  ;;  %v920_v51 = vadd.f32 %v1641_v34, %v2558_v9  ;;  %v1112_v53 = vadd.f32 %v1689_v43, %v2558_v9 }
 0x140   : > { %v911_v57 = vpop.f32.mrf.mxu0  ;;  %v1103_v62 = vpop.f32.mrf.mxu1 }
 0x141   : > { %1248 = vst [vmem:[%s2562_s30 + $0x90] sm:$0xff] %v920_v51  ;;  %1296 = vst [vmem:[%s2562_s30 + $0x210] sm:$0xff] %v1112_v53  ;;  %v912_v63 = vadd.f32 %v2558_v9, %v911_v57  ;;  %v1104_v1 = vadd.f32 %v2558_v9, %v1103_v62 }
 0x142   : > { %v1642_v15 = vpop.f32.mrf.mxu0  ;;  %v1690_v20 = vpop.f32.mrf.mxu1 }
 0x143   : > { %1246 = vst [vmem:[%s2562_s30 + $0x80] sm:$0xff] %v912_v63  ;;  %1294 = vst [vmem:[%s2562_s30 + $0x200] sm:$0xff] %v1104_v1  ;;  %v923_v26 = vadd.f32 %v1642_v15, %v2558_v9  ;;  %v1115_v45 = vadd.f32 %v1690_v20, %v2558_v9 }
 0x144   : > { %v914_v49 = vpop.f32.mrf.mxu0  ;;  %v1106_v52 = vpop.f32.mrf.mxu1 }
 0x145   : > { %1249 = vst [vmem:[%s2562_s30 + $0x98] sm:$0xff] %v923_v26  ;;  %1297 = vst [vmem:[%s2562_s30 + $0x218] sm:$0xff] %v1115_v45  ;;  %v915_v59 = vadd.f32 %v2558_v9, %v914_v49  ;;  %v1107_v60 = vadd.f32 %v2558_v9, %v1106_v52 }
 0x146   : > { %v1645_v61 = vpop.f32.mrf.mxu0  ;;  %v1693_v0 = vpop.f32.mrf.mxu1 }
 0x147   : > { %1247 = vst [vmem:[%s2562_s30 + $0x88] sm:$0xff] %v915_v59  ;;  %1295 = vst [vmem:[%s2562_s30 + $0x208] sm:$0xff] %v1107_v60  ;;  %v936_v2 = vadd.f32 %v1645_v61, %v2558_v9  ;;  %v1128_v3 = vadd.f32 %v1693_v0, %v2558_v9 }
 0x148   : > { %v927_v4 = vpop.f32.mrf.mxu0  ;;  %v1119_v6 = vpop.f32.mrf.mxu1 }
 0x149   : > { %1252 = vst [vmem:[%s2562_s30 + $0xb0] sm:$0xff] %v936_v2  ;;  %1300 = vst [vmem:[%s2562_s30 + $0x230] sm:$0xff] %v1128_v3  ;;  %v928_v7 = vadd.f32 %v2558_v9, %v927_v4  ;;  %v1120_v8 = vadd.f32 %v2558_v9, %v1119_v6 }
 0x14a   : > { %v1646_v10 = vpop.f32.mrf.mxu0  ;;  %v1694_v12 = vpop.f32.mrf.mxu1 }
 0x14b   : > { %1250 = vst [vmem:[%s2562_s30 + $0xa0] sm:$0xff] %v928_v7  ;;  %1298 = vst [vmem:[%s2562_s30 + $0x220] sm:$0xff] %v1120_v8  ;;  %v939_v14 = vadd.f32 %v1646_v10, %v2558_v9  ;;  %v1131_v16 = vadd.f32 %v1694_v12, %v2558_v9 }
 0x14c   : > { %v930_v19 = vpop.f32.mrf.mxu0  ;;  %v1122_v22 = vpop.f32.mrf.mxu1 }
 0x14d   : > { %1253 = vst [vmem:[%s2562_s30 + $0xb8] sm:$0xff] %v939_v14  ;;  %1301 = vst [vmem:[%s2562_s30 + $0x238] sm:$0xff] %v1131_v16  ;;  %v931_v24 = vadd.f32 %v2558_v9, %v930_v19  ;;  %v1123_v27 = vadd.f32 %v2558_v9, %v1122_v22 }
 0x14e   : > { %v1649_v31 = vpop.f32.mrf.mxu0  ;;  %v1697_v18 = vpop.f32.mrf.mxu1 }
 0x14f   : > { %1251 = vst [vmem:[%s2562_s30 + $0xa8] sm:$0xff] %v931_v24  ;;  %1299 = vst [vmem:[%s2562_s30 + $0x228] sm:$0xff] %v1123_v27  ;;  %v952_v33 = vadd.f32 %v1649_v31, %v2558_v9  ;;  %v1144_v36 = vadd.f32 %v1697_v18, %v2558_v9 }
 0x150   : > { %v943_v39 = vpop.f32.mrf.mxu0  ;;  %v1135_v28 = vpop.f32.mrf.mxu1 }
 0x151   : > { %1256 = vst [vmem:[%s2562_s30 + $0xd0] sm:$0xff] %v952_v33  ;;  %1304 = vst [vmem:[%s2562_s30 + $0x250] sm:$0xff] %v1144_v36  ;;  %v944_v42 = vadd.f32 %v2558_v9, %v943_v39  ;;  %v1136_v21 = vadd.f32 %v2558_v9, %v1135_v28 }
 0x152   : > { %v1650_v35 = vpop.f32.mrf.mxu0  ;;  %v1698_v44 = vpop.f32.mrf.mxu1 }
 0x153   : > { %1254 = vst [vmem:[%s2562_s30 + $0xc0] sm:$0xff] %v944_v42  ;;  %1302 = vst [vmem:[%s2562_s30 + $0x240] sm:$0xff] %v1136_v21  ;;  %v955_v47 = vadd.f32 %v1650_v35, %v2558_v9  ;;  %v1147_v48 = vadd.f32 %v1698_v44, %v2558_v9 }
 0x154   : > { %v946_v50 = vpop.f32.mrf.mxu0  ;;  %v1138_v58 = vpop.f32.mrf.mxu1 }
 0x155   : > { %1257 = vst [vmem:[%s2562_s30 + $0xd8] sm:$0xff] %v955_v47  ;;  %1305 = vst [vmem:[%s2562_s30 + $0x258] sm:$0xff] %v1147_v48  ;;  %v947_v17 = vadd.f32 %v2558_v9, %v946_v50  ;;  %v1139_v13 = vadd.f32 %v2558_v9, %v1138_v58 }
 0x156   : > { %v1653_v5 = vpop.f32.mrf.mxu0  ;;  %v1701_v30 = vpop.f32.mrf.mxu1 }
 0x157   : > { %1255 = vst [vmem:[%s2562_s30 + $0xc8] sm:$0xff] %v947_v17  ;;  %1303 = vst [vmem:[%s2562_s30 + $0x248] sm:$0xff] %v1139_v13  ;;  %v968_v55 = vadd.f32 %v1653_v5, %v2558_v9  ;;  %v1160_v56 = vadd.f32 %v1701_v30, %v2558_v9 }
 0x158   : > { %v959_v37 = vpop.f32.mrf.mxu0  ;;  %v1151_v23 = vpop.f32.mrf.mxu1 }
 0x159   : > { %1260 = vst [vmem:[%s2562_s30 + $0xf0] sm:$0xff] %v968_v55  ;;  %1308 = vst [vmem:[%s2562_s30 + $0x270] sm:$0xff] %v1160_v56  ;;  %v960_v29 = vadd.f32 %v2558_v9, %v959_v37  ;;  %v1152_v32 = vadd.f32 %v2558_v9, %v1151_v23 }
 0x15a   : > { %v1654_v38 = vpop.f32.mrf.mxu0  ;;  %v1702_v40 = vpop.f32.mrf.mxu1 }
 0x15b   : > { %1258 = vst [vmem:[%s2562_s30 + $0xe0] sm:$0xff] %v960_v29  ;;  %1306 = vst [vmem:[%s2562_s30 + $0x260] sm:$0xff] %v1152_v32  ;;  %v971_v54 = vadd.f32 %v1654_v38, %v2558_v9  ;;  %v1163_v41 = vadd.f32 %v1702_v40, %v2558_v9 }
 0x15c   : > { %v962_v11 = vpop.f32.mrf.mxu0  ;;  %v1154_v46 = vpop.f32.mrf.mxu1 }
 0x15d   : > { %1261 = vst [vmem:[%s2562_s30 + $0xf8] sm:$0xff] %v971_v54  ;;  %1309 = vst [vmem:[%s2562_s30 + $0x278] sm:$0xff] %v1163_v41  ;;  %v963_v25 = vadd.f32 %v2558_v9, %v962_v11  ;;  %v1155_v34 = vadd.f32 %v2558_v9, %v1154_v46 }
 0x15e   : > { %v1657_v43 = vpop.f32.mrf.mxu0  ;;  %v1705_v51 = vpop.f32.mrf.mxu1 }
 0x15f   : > { %1259 = vst [vmem:[%s2562_s30 + $0xe8] sm:$0xff] %v963_v25  ;;  %1307 = vst [vmem:[%s2562_s30 + $0x268] sm:$0xff] %v1155_v34  ;;  %v984_v53 = vadd.f32 %v1657_v43, %v2558_v9  ;;  %v1176_v57 = vadd.f32 %v1705_v51, %v2558_v9 }
 0x160   : > { %v975_v62 = vpop.f32.mrf.mxu0  ;;  %v1167_v63 = vpop.f32.mrf.mxu1 }
 0x161   : > { %1264 = vst [vmem:[%s2562_s30 + $0x110] sm:$0xff] %v984_v53  ;;  %1312 = vst [vmem:[%s2562_s30 + $0x290] sm:$0xff] %v1176_v57  ;;  %v976_v1 = vadd.f32 %v2558_v9, %v975_v62  ;;  %v1168_v15 = vadd.f32 %v2558_v9, %v1167_v63 }
 0x162   : > { %v1658_v20 = vpop.f32.mrf.mxu0  ;;  %v1706_v26 = vpop.f32.mrf.mxu1 }
 0x163   : > { %1262 = vst [vmem:[%s2562_s30 + $0x100] sm:$0xff] %v976_v1  ;;  %1310 = vst [vmem:[%s2562_s30 + $0x280] sm:$0xff] %v1168_v15  ;;  %v987_v45 = vadd.f32 %v1658_v20, %v2558_v9  ;;  %v1179_v49 = vadd.f32 %v1706_v26, %v2558_v9 }
 0x164   : > { %v978_v52 = vpop.f32.mrf.mxu0  ;;  %v1170_v59 = vpop.f32.mrf.mxu1 }
 0x165   : > { %1265 = vst [vmem:[%s2562_s30 + $0x118] sm:$0xff] %v987_v45  ;;  %1313 = vst [vmem:[%s2562_s30 + $0x298] sm:$0xff] %v1179_v49  ;;  %v979_v60 = vadd.f32 %v2558_v9, %v978_v52  ;;  %v1171_v61 = vadd.f32 %v2558_v9, %v1170_v59 }
 0x166   : > { %v1661_v0 = vpop.f32.mrf.mxu0  ;;  %v1709_v2 = vpop.f32.mrf.mxu1 }
 0x167   : > { %1263 = vst [vmem:[%s2562_s30 + $0x108] sm:$0xff] %v979_v60  ;;  %1311 = vst [vmem:[%s2562_s30 + $0x288] sm:$0xff] %v1171_v61  ;;  %v1000_v3 = vadd.f32 %v1661_v0, %v2558_v9  ;;  %v1192_v4 = vadd.f32 %v1709_v2, %v2558_v9 }
 0x168   : > { %v991_v6 = vpop.f32.mrf.mxu0  ;;  %v1183_v7 = vpop.f32.mrf.mxu1 }
 0x169   : > { %1268 = vst [vmem:[%s2562_s30 + $0x130] sm:$0xff] %v1000_v3  ;;  %1316 = vst [vmem:[%s2562_s30 + $0x2b0] sm:$0xff] %v1192_v4  ;;  %v992_v8 = vadd.f32 %v2558_v9, %v991_v6  ;;  %v1184_v10 = vadd.f32 %v2558_v9, %v1183_v7 }
 0x16a   : > { %v1662_v12 = vpop.f32.mrf.mxu0  ;;  %v1710_v14 = vpop.f32.mrf.mxu1 }
 0x16b   : > { %1266 = vst [vmem:[%s2562_s30 + $0x120] sm:$0xff] %v992_v8  ;;  %1314 = vst [vmem:[%s2562_s30 + $0x2a0] sm:$0xff] %v1184_v10  ;;  %v1003_v16 = vadd.f32 %v1662_v12, %v2558_v9  ;;  %v1195_v19 = vadd.f32 %v1710_v14, %v2558_v9 }
 0x16c   : > { %v994_v22 = vpop.f32.mrf.mxu0  ;;  %v1186_v24 = vpop.f32.mrf.mxu1 }
 0x16d   : > { %1269 = vst [vmem:[%s2562_s30 + $0x138] sm:$0xff] %v1003_v16  ;;  %1317 = vst [vmem:[%s2562_s30 + $0x2b8] sm:$0xff] %v1195_v19  ;;  %v995_v27 = vadd.f32 %v2558_v9, %v994_v22  ;;  %v1187_v31 = vadd.f32 %v2558_v9, %v1186_v24 }
 0x16e   : > { %v1665_v18 = vpop.f32.mrf.mxu0  ;;  %v1713_v33 = vpop.f32.mrf.mxu1 }
 0x16f   : > { %1267 = vst [vmem:[%s2562_s30 + $0x128] sm:$0xff] %v995_v27  ;;  %1315 = vst [vmem:[%s2562_s30 + $0x2a8] sm:$0xff] %v1187_v31  ;;  %v1016_v36 = vadd.f32 %v1665_v18, %v2558_v9  ;;  %v1208_v39 = vadd.f32 %v1713_v33, %v2558_v9 }
 0x170   : > { %v1007_v28 = vpop.f32.mrf.mxu0  ;;  %v1199_v42 = vpop.f32.mrf.mxu1 }
 0x171   : > { %1272 = vst [vmem:[%s2562_s30 + $0x150] sm:$0xff] %v1016_v36  ;;  %1320 = vst [vmem:[%s2562_s30 + $0x2d0] sm:$0xff] %v1208_v39  ;;  %v1008_v21 = vadd.f32 %v2558_v9, %v1007_v28  ;;  %v1200_v35 = vadd.f32 %v2558_v9, %v1199_v42 }
 0x172   : > { %v1666_v44 = vpop.f32.mrf.mxu0  ;;  %v1714_v47 = vpop.f32.mrf.mxu1 }
 0x173   : > { %1270 = vst [vmem:[%s2562_s30 + $0x140] sm:$0xff] %v1008_v21  ;;  %1318 = vst [vmem:[%s2562_s30 + $0x2c0] sm:$0xff] %v1200_v35  ;;  %v1019_v48 = vadd.f32 %v1666_v44, %v2558_v9  ;;  %v1211_v50 = vadd.f32 %v1714_v47, %v2558_v9 }
 0x174   : > { %v1010_v58 = vpop.f32.mrf.mxu0  ;;  %v1202_v17 = vpop.f32.mrf.mxu1 }
 0x175   : > { %1273 = vst [vmem:[%s2562_s30 + $0x158] sm:$0xff] %v1019_v48  ;;  %1321 = vst [vmem:[%s2562_s30 + $0x2d8] sm:$0xff] %v1211_v50  ;;  %v1011_v13 = vadd.f32 %v2558_v9, %v1010_v58  ;;  %v1203_v5 = vadd.f32 %v2558_v9, %v1202_v17 }
 0x176   : > { %v1669_v30 = vpop.f32.mrf.mxu0  ;;  %v1717_v55 = vpop.f32.mrf.mxu1 }
 0x177   : > { %1271 = vst [vmem:[%s2562_s30 + $0x148] sm:$0xff] %v1011_v13  ;;  %1319 = vst [vmem:[%s2562_s30 + $0x2c8] sm:$0xff] %v1203_v5  ;;  %v1032_v56 = vadd.f32 %v1669_v30, %v2558_v9  ;;  %v1224_v37 = vadd.f32 %v1717_v55, %v2558_v9 }
 0x178   : > { %v1023_v23 = vpop.f32.mrf.mxu0  ;;  %v1215_v29 = vpop.f32.mrf.mxu1 }
 0x179   : > { %1276 = vst [vmem:[%s2562_s30 + $0x170] sm:$0xff] %v1032_v56  ;;  %1324 = vst [vmem:[%s2562_s30 + $0x2f0] sm:$0xff] %v1224_v37  ;;  %v1024_v32 = vadd.f32 %v2558_v9, %v1023_v23  ;;  %v1216_v38 = vadd.f32 %v2558_v9, %v1215_v29 }
 0x17a   : > { %v1670_v40 = vpop.f32.mrf.mxu0  ;;  %v1718_v54 = vpop.f32.mrf.mxu1 }
 0x17b   : > { %1274 = vst [vmem:[%s2562_s30 + $0x160] sm:$0xff] %v1024_v32  ;;  %1322 = vst [vmem:[%s2562_s30 + $0x2e0] sm:$0xff] %v1216_v38  ;;  %v1035_v41 = vadd.f32 %v1670_v40, %v2558_v9  ;;  %v1227_v11 = vadd.f32 %v1718_v54, %v2558_v9 }
 0x17c   : > { %v1026_v46 = vpop.f32.mrf.mxu0  ;;  %v1218_v25 = vpop.f32.mrf.mxu1 }
 0x17d   : > { %1277 = vst [vmem:[%s2562_s30 + $0x178] sm:$0xff] %v1035_v41  ;;  %1325 = vst [vmem:[%s2562_s30 + $0x2f8] sm:$0xff] %v1227_v11  ;;  %v1027_v34 = vadd.f32 %v2558_v9, %v1026_v46  ;;  %v1219_v43 = vadd.f32 %v2558_v9, %v1218_v25 }
 0x17f   : > { %1275 = vst [vmem:[%s2562_s30 + $0x168] sm:$0xff] %v1027_v34  ;;  %1323 = vst [vmem:[%s2562_s30 + $0x2e8] sm:$0xff] %v1219_v43 }
 0x180   : > { %1939 = shalt.err (!%p1936_p4)
}
 0x181   : > { %s1940_s19 = scalar_lea.hbm %s2753_s5, 12288  ;;  %s1944_s20 = scalar_lea.hbm %s2812_s3, 24576 }
 0x182   : > { %p1941_p6 = scmp.ne.s32.totalorder %s2753_s5, %s1940_s19  ;;  %p1945_p0 = scmp.lt.s32.totalorder %s2753_s5, %s2812_s3 }
 0x183   : > { %p1946_p3 = scmp.lt.s32.totalorder %s1944_s20, %s1940_s19 }
 0x184   : > { %p1942_p9 = pnand %p1941_p6, %p2126_p13 }
 0x185   : > { %p1947_p1 = por %p1946_p3, %p1945_p0 }
 0x186   : > { %p1943_p12 = pneg %p1942_p9 }
 0x188   : > { %p1948_p8 = pnand %p1947_p1, %p1943_p12 }
 0x18a   : > { %1951 = shalt.err (!%p1948_p8)
}
 0x18b   : > { %s2018_s30 = smov 128   ;;  %s2019_s4 = smov 8  }
 0x18c   : > { %1744 = dma.vmem_to_hbm [thread:$0]  (%p2126_p13), %s2755_s26, 12288, %s2753_s5, %s1327_s6, %s2018_s30, %s2018_s30, %s2019_s4  }
 0x18d PF: > { %s1356_s15 = sand.u32 1, %s1990_s12   ;;  %p2825_p11 = scmp.ne.s32.totalorder %s2817_s23, 0 }
 0x18e   : > { %s1357_s27 = scalar_lea.sflag [#allocation4], %s1356_s15 }
 0x18f   : > { %p1755_p2 = pnand %p1453_p10, %p2825_p11 }
 0x191   : > { %p1756_p5 = pneg %p1755_p2 }
 0x193   : > { %1985 = dma.done.wait (%p1756_p5), %s1357_s27, 12288  }
 0x194   : > { %1987 = vsyncadd (%p1756_p5), %s1357_s27, 4294955008  ;;  %s20_s17 = sadd.s32 1, %s2010_s17   ;;  %s2826_s12 = smov %s1994_s13 }
 0x195   : > { %p17_p7 = scmp.ge.s32.totalorder %s20_s17, 4   ;;  %s2827_s13 = smov %s1998_s14 }
 0x196   : > { %s2828_s14 = smov %s2135_s18  ;;  %s2829_s15 = smov %s2006_s16 }
 0x197   : > { %s2830_s16 = smov %s2832_s28  ;;  %19 = sbr.rel (!%p17_p7) target bundleno = 7 (0x7), region = 85 }
 0x19c   :  { %1362 = vsyncpa [#allocation3], 1 }
 0x19d   :  { %1364 = vsyncpa [#allocation3 + $0x1], 1 }
 0x19e   :  { %1365 = vsyncpa [#allocation6], 1 }
 0x19f   :  { %1366 = vsyncpa [#allocation4], 1 }
 0x1a0   :  { %1368 = vsyncpa [#allocation4 + $0x1], 1 }

</bundles_post_ra>
